<compile_context>
chip_gen: v6e
topology: v6e:2x2x1
jax: 0.10.0
libtpu: 0.0.40
codegen_flags: <defaults>
</compile_context>

<pallas_src>
import functools

import jax
import jax.numpy as jnp
from jax.experimental import pallas as pl
from jax.experimental.pallas import tpu as pltpu


def _attention_kernel(x_ref, wqkv_ref, wo_ref, bo_ref, o_ref, acc_ref, *,
                      scale, n_tokens, batch_block, head_block, dim_head,
                      mxu_dtype):
    # x_ref:    (Bb*N, D)        tokens of this batch block (resident across groups)
    # wqkv_ref: (1, D, 3*hb*dh)  fused [Q|K|V] weights of this head group
    # wo_ref:   (1, hb*dh, D)    this head group's slice of the output projection
    # bo_ref:   (1, D)           output projection bias (resident)
    # o_ref:    (Bb*N, D)        output tokens (same block across head groups)
    # acc_ref:  (Bb*N, D) f32    VMEM accumulator over head groups
    g = pl.program_id(1)

    @pl.when(g == 0)
    def _init():
        acc_ref[...] = jnp.zeros_like(acc_ref)

    hd = head_block * dim_head

    # --- fused q/k/v projection: one wide MXU pass for the whole head group ---
    xb = x_ref[...].astype(mxu_dtype)                         # (Bb*N, D)
    wqkv = wqkv_ref[0].astype(mxu_dtype)                      # (D, 3*hb*dh)
    qkv = jnp.dot(xb, wqkv, preferred_element_type=jnp.float32)

    q_all = qkv[:, :hd] * scale      # fold softmax scale into q (N*dh, not N*N, muls)
    k_all = qkv[:, hd:2 * hd]
    v_all = qkv[:, 2 * hd:3 * hd]

    # --- per (batch-in-block, head-in-group) attention; static unrolled loops ---
    batch_rows = []
    for b in range(batch_block):
        r0 = b * n_tokens
        head_cols = []
        for h in range(head_block):
            c0 = h * dim_head
            q = q_all[r0:r0 + n_tokens, c0:c0 + dim_head].astype(mxu_dtype)
            k = k_all[r0:r0 + n_tokens, c0:c0 + dim_head].astype(mxu_dtype)
            v = v_all[r0:r0 + n_tokens, c0:c0 + dim_head].astype(mxu_dtype)
            s = jax.lax.dot_general(                       # q @ k^T, no XLU transpose
                q, k, dimension_numbers=(((1,), (1,)), ((), ())),
                preferred_element_type=jnp.float32)        # (N, N) f32
            m = jnp.max(s, axis=-1, keepdims=True)
            p = jnp.exp(s - m)
            l = jnp.sum(p, axis=-1, keepdims=True)
            o = jnp.dot(p.astype(mxu_dtype), v,
                        preferred_element_type=jnp.float32)    # (N, dh) f32
            # division by l distributes through the matmul; reciprocal runs on EUP
            head_cols.append(o * pl.reciprocal(l, approx=True))
        row = head_cols[0] if head_block == 1 else jnp.concatenate(head_cols, axis=-1)
        batch_rows.append(row)
    out_block = (batch_rows[0] if batch_block == 1
                 else jnp.concatenate(batch_rows, axis=0))     # (Bb*N, hb*dh) f32

    # --- this head group's contribution to the output projection (one deep-K dot) ---
    wo = wo_ref[0].astype(mxu_dtype)                           # (hb*dh, D)
    acc_ref[...] += jnp.dot(out_block.astype(mxu_dtype), wo,
                            preferred_element_type=jnp.float32)

    @pl.when(g == pl.num_programs(1) - 1)
    def _finalize():
        o_ref[...] = (acc_ref[...] + bo_ref[...].astype(jnp.float32)).astype(o_ref.dtype)


def _largest_divisor_at_most(total, cap):
    for cand in range(min(cap, total), 0, -1):
        if total % cand == 0:
            return cand
    return 1


@functools.partial(jax.jit, static_argnames=("heads", "dim_head"))
def attention_fn(x, w_q, w_k, w_v, w_out, b_out, *, heads, dim_head):
    """Multi-head self-attention: x (B, N, D) -> (B, N, D).

    w_q / w_k / w_v : (heads, D, dim_head)   per-head projection weights (x @ w)
    w_out           : (heads, dim_head, D)   per-head slices of the output projection
    b_out           : (D,)                   output projection bias
    """
    B, N, D = x.shape
    scale = float(dim_head) ** -0.5

    # Static block sizes: hb heads per grid step, Bb batch elements per grid step.
    hb = _largest_divisor_at_most(heads, 4)
    bb = _largest_divisor_at_most(B, 2)
    n_groups = heads // hb
    hd = hb * dim_head

    # Fused per-group QKV slab: (groups, D, 3*hb*dh); last axis = [Q_g | K_g | V_g]
    # so in-kernel q/k/v slices start at multiples of hb*dh (lane-tile aligned).
    def _grp(w):  # (heads, D, dh) -> (groups, D, hb*dh)
        return (w.reshape(n_groups, hb, D, dim_head)
                 .transpose(0, 2, 1, 3)
                 .reshape(n_groups, D, hd))

    w_qkv_g = jnp.concatenate([_grp(w_q), _grp(w_k), _grp(w_v)], axis=-1)
    w_out_g = w_out.reshape(n_groups, hd, D)
    b_out2 = b_out.reshape(1, D)

    # Flatten batch into rows: projection matmuls see M = Bb*N and head weights
    # are streamed B/Bb (not B) times from HBM.
    x_flat = x.reshape(B * N, D)

    mxu_dtype = jnp.bfloat16 if x.dtype == jnp.float32 else x.dtype

    isz = jnp.dtype(x.dtype).itemsize
    flops = B * heads * (8 * N * D * dim_head + 4 * N * N * dim_head)
    bytes_accessed = int(
        x.size * isz                                            # x streamed once
        + (B // bb) * (w_qkv_g.size + w_out_g.size) * isz       # weights per batch block
        + b_out.size * isz
        + B * N * D * isz                                       # output written once
    )

    # Explicit VMEM budget: double-buffered blocks + f32 intermediates + headroom.
    blk_bytes = 2 * isz * (bb * N * D + D * 3 * hd + hd * D + D + bb * N * D)
    interm_bytes = 4 * (bb * N * 3 * hd + bb * N * D + 2 * N * N + bb * N * hd)
    vmem_limit = int(1.5 * (blk_bytes + interm_bytes)) + (8 << 20)
    vmem_limit = max(32 << 20, min(vmem_limit, 64 << 20))

    kernel = functools.partial(
        _attention_kernel, scale=scale, n_tokens=N, batch_block=bb,
        head_block=hb, dim_head=dim_head, mxu_dtype=mxu_dtype)

    out_flat = pl.pallas_call(
        kernel,
        out_shape=jax.ShapeDtypeStruct((B * N, D), x.dtype),
        grid_spec=pltpu.PrefetchScalarGridSpec(
            num_scalar_prefetch=0,
            grid=(B // bb, n_groups),                    # head-group (reduction) axis last
            in_specs=[
                pl.BlockSpec((bb * N, D), lambda b, g: (b, 0)),          # x rows
                pl.BlockSpec((1, D, 3 * hd), lambda b, g: (g, 0, 0)),    # fused QKV weights
                pl.BlockSpec((1, hd, D), lambda b, g: (g, 0, 0)),        # W_out group slice
                pl.BlockSpec((1, D), lambda b, g: (0, 0)),               # bias (resident)
            ],
            out_specs=pl.BlockSpec((bb * N, D), lambda b, g: (b, 0)),
            scratch_shapes=[pltpu.VMEM((bb * N, D), jnp.float32)],
        ),
        compiler_params=pltpu.CompilerParams(
            dimension_semantics=("parallel", "arbitrary"),
            vmem_limit_bytes=vmem_limit,
        ),
        cost_estimate=pl.CostEstimate(
            flops=flops,
            transcendentals=B * heads * N * N,
            bytes_accessed=bytes_accessed,
        ),
    )(x_flat, w_qkv_g, w_out_g, b_out2)
    # TODO(synk): for long sequences on v7x (64 MiB VMEM, 2 TCs, B=1) add a
    # query-tile grid axis with an online-softmax KV loop so the live score
    # block becomes (tq, tk) instead of (N, N) and both cores get work.
    return out_flat.reshape(B, N, D)


def _reference(x, w_q, w_k, w_v, w_out, b_out, *, scale):
    q = jnp.einsum("bnd,hdk->bhnk", x, w_q)
    k = jnp.einsum("bnd,hdk->bhnk", x, w_k)
    v = jnp.einsum("bnd,hdk->bhnk", x, w_v)
    dots = jnp.einsum("bhid,bhjd->bhij", q, k) * scale
    attn = jax.nn.softmax(dots, axis=-1)
    out = jnp.einsum("bhij,bhjd->bhid", attn, v)
    # rearrange 'b h n d -> b n (h d)' followed by Linear(inner, dim) + bias
    return jnp.einsum("bhnd,hdk->bnk", out, w_out) + b_out


if __name__ == "__main__":
    key = jax.random.PRNGKey(0)
    B, N, dim = 2, 8, 32           # batch=2, seq=8, hidden (module `dim`)=32
    heads, dim_head = 8, 64        # module defaults -> inner_dim=512, project_out=True
    scale = dim_head ** -0.5

    kx, kq, kk, kv, ko, kb = jax.random.split(key, 6)
    x = jax.random.normal(kx, (B, N, dim), dtype=jnp.float32)
    w_q = jax.random.normal(kq, (heads, dim, dim_head), dtype=jnp.float32) * 0.05
    w_k = jax.random.normal(kk, (heads, dim, dim_head), dtype=jnp.float32) * 0.05
    w_v = jax.random.normal(kv, (heads, dim, dim_head), dtype=jnp.float32) * 0.05
    w_out = jax.random.normal(ko, (heads, dim_head, dim), dtype=jnp.float32) * 0.05
    b_out = jax.random.normal(kb, (dim,), dtype=jnp.float32) * 0.02
    # TODO(synk): nn.Dropout(p=0.0) in eval mode is the identity and is omitted.

    out = attention_fn(x, w_q, w_k, w_v, w_out, b_out, heads=heads, dim_head=dim_head)
    out = jax.block_until_ready(out)

    ref = _reference(x, w_q, w_k, w_v, w_out, b_out, scale=scale)
    assert out.shape == (B, N, dim), out.shape
    # bf16 MXU operands (with f32 accumulation) drift slightly from the f32 reference.
    assert jnp.allclose(out, ref, atol=5e-2, rtol=5e-2), \
        float(jnp.max(jnp.abs(out - ref)))

    print("KERNEL_OK")
</pallas_src>

<mosaic_0001>
module attributes {stable_mosaic.version = 11 : i64} {
  func.func @_attention_kernel(%arg0: i32, %arg1: i32, %arg2: memref<16x32xf32, #tpu.memory_space<vmem>>, %arg3: memref<1x32x768xf32, #tpu.memory_space<vmem>>, %arg4: memref<1x256x32xf32, #tpu.memory_space<vmem>>, %arg5: memref<1x32xf32, #tpu.memory_space<vmem>>, %arg6: memref<16x32xf32, #tpu.memory_space<vmem>>, %arg7: memref<16x32xf32, #tpu.memory_space<vmem>>) attributes {dimension_semantics = [#tpu.dimension_semantics<parallel>, #tpu.dimension_semantics<arbitrary>], iteration_bounds = array<i64: 1, 2>, scalar_prefetch = 0 : i64, scratch_operands = 1 : i64, tpu.core_type = #tpu.core_type<tc>, window_params = [{transform_indices = @transform_0, window_bounds = array<i64: 16, 32>}, {transform_indices = @transform_1, window_bounds = array<i64: 1, 32, 768>}, {transform_indices = @transform_2, window_bounds = array<i64: 1, 256, 32>}, {pipeline_mode = #tpu.pipeline_mode<synchronous>, transform_indices = @transform_3, window_bounds = array<i64: 1, 32>}, {transform_indices = @transform_4, window_bounds = array<i64: 16, 32>}]} {
    %c0_i32 = arith.constant 0 : i32
    %0 = arith.cmpi eq, %arg1, %c0_i32 : i32
    %1 = arith.extui %0 : i1 to i32
    %c0_i32_0 = arith.constant 0 : i32
    %2 = arith.cmpi ne, %1, %c0_i32_0 : i32
    scf.if %2 {
      %cst_47 = arith.constant 0.000000e+00 : f32
      %180 = vector.broadcast %cst_47 : f32 to vector<16x32xf32>
      %c0_48 = arith.constant 0 : index
      %c0_49 = arith.constant 0 : index
      %181 = vector.load %arg7[%c0_48, %c0_49] : memref<16x32xf32, #tpu.memory_space<vmem>>, vector<16x32xf32>
      tpu.vector_store %arg7[%c0_48, %c0_49], %180 {strides = array<i32>} : memref<16x32xf32, #tpu.memory_space<vmem>>, vector<16x32xf32>,
    } else {
    }
    %c0 = arith.constant 0 : index
    %c0_1 = arith.constant 0 : index
    %3 = vector.load %arg2[%c0, %c0_1] : memref<16x32xf32, #tpu.memory_space<vmem>>, vector<16x32xf32>
    %4 = arith.truncf %3 : vector<16x32xf32> to vector<16x32xbf16>
    %c0_2 = arith.constant 0 : index
    %c0_3 = arith.constant 0 : index
    %c0_4 = arith.constant 0 : index
    %5 = vector.load %arg3[%c0_2, %c0_3, %c0_4] : memref<1x32x768xf32, #tpu.memory_space<vmem>>, vector<1x32x768xf32>
    %6 = vector.shape_cast %5 : vector<1x32x768xf32> to vector<32x768xf32>
    %7 = arith.truncf %6 : vector<32x768xf32> to vector<32x768xbf16>
    %cst = arith.constant dense<0.000000e+00> : vector<16x768xf32>
    %8 = tpu.matmul %4, %7, %cst {dimension_numbers = #tpu.dot_dimension_numbers<[1], [0], [0], [1], [0, 0, 1, 1], [], []>} : vector<16x32xbf16>, vector<32x768xbf16>, vector<16x768xf32> -> vector<16x768xf32>
    %9 = vector.extract_strided_slice %8 {offsets = [0, 0], sizes = [16, 256], strides = [1, 1]} : vector<16x768xf32> to vector<16x256xf32>
    %cst_5 = arith.constant 1.250000e-01 : f32
    %10 = vector.broadcast %cst_5 : f32 to vector<16x256xf32>
    %11 = arith.mulf %9, %10 : vector<16x256xf32>
    %12 = vector.extract_strided_slice %8 {offsets = [0, 256], sizes = [16, 256], strides = [1, 1]} : vector<16x768xf32> to vector<16x256xf32>
    %13 = vector.extract_strided_slice %8 {offsets = [0, 512], sizes = [16, 256], strides = [1, 1]} : vector<16x768xf32> to vector<16x256xf32>
    %14 = vector.extract_strided_slice %11 {offsets = [0, 0], sizes = [8, 64], strides = [1, 1]} : vector<16x256xf32> to vector<8x64xf32>
    %15 = arith.truncf %14 : vector<8x64xf32> to vector<8x64xbf16>
    %16 = vector.extract_strided_slice %12 {offsets = [0, 0], sizes = [8, 64], strides = [1, 1]} : vector<16x256xf32> to vector<8x64xf32>
    %17 = arith.truncf %16 : vector<8x64xf32> to vector<8x64xbf16>
    %18 = vector.extract_strided_slice %13 {offsets = [0, 0], sizes = [8, 64], strides = [1, 1]} : vector<16x256xf32> to vector<8x64xf32>
    %19 = arith.truncf %18 : vector<8x64xf32> to vector<8x64xbf16>
    %cst_6 = arith.constant dense<0.000000e+00> : vector<8x8xf32>
    %20 = tpu.matmul %15, %17, %cst_6 {dimension_numbers = #tpu.dot_dimension_numbers<[1], [1], [0], [0], [0, 0, 1, 0], [], []>} : vector<8x64xbf16>, vector<8x64xbf16>, vector<8x8xf32> -> vector<8x8xf32>
    %cst_7 = arith.constant dense<0xFF800000> : vector<8xf32>
    %21 = vector.multi_reduction <maximumf>, %20, %cst_7 [1] : vector<8x8xf32> to vector<8xf32>
    %22 = vector.shape_cast %21 : vector<8xf32> to vector<8x1xf32>
    %23 = vector.broadcast %22 : vector<8x1xf32> to vector<8x8xf32>
    %24 = arith.subf %20, %23 : vector<8x8xf32>
    %25 = math.exp %24 : vector<8x8xf32>
    %cst_8 = arith.constant dense<0.000000e+00> : vector<8xf32>
    %26 = vector.multi_reduction <add>, %25, %cst_8 [1] : vector<8x8xf32> to vector<8xf32>
    %27 = vector.shape_cast %26 : vector<8xf32> to vector<8x1xf32>
    %28 = arith.truncf %25 : vector<8x8xf32> to vector<8x8xbf16>
    %cst_9 = arith.constant dense<0.000000e+00> : vector<8x64xf32>
    %29 = tpu.matmul %28, %19, %cst_9 {dimension_numbers = #tpu.dot_dimension_numbers<[1], [0], [0], [1], [0, 0, 1, 1], [], []>} : vector<8x8xbf16>, vector<8x64xbf16>, vector<8x64xf32> -> vector<8x64xf32>
    %30 = tpu.reciprocal %27 {approx = true} : vector<8x1xf32> -> vector<8x1xf32>
    %31 = vector.broadcast %30 : vector<8x1xf32> to vector<8x64xf32>
    %32 = arith.mulf %29, %31 : vector<8x64xf32>
    %33 = vector.extract_strided_slice %11 {offsets = [0, 64], sizes = [8, 64], strides = [1, 1]} : vector<16x256xf32> to vector<8x64xf32>
    %34 = arith.truncf %33 : vector<8x64xf32> to vector<8x64xbf16>
    %35 = vector.extract_strided_slice %12 {offsets = [0, 64], sizes = [8, 64], strides = [1, 1]} : vector<16x256xf32> to vector<8x64xf32>
    %36 = arith.truncf %35 : vector<8x64xf32> to vector<8x64xbf16>
    %37 = vector.extract_strided_slice %13 {offsets = [0, 64], sizes = [8, 64], strides = [1, 1]} : vector<16x256xf32> to vector<8x64xf32>
    %38 = arith.truncf %37 : vector<8x64xf32> to vector<8x64xbf16>
    %cst_10 = arith.constant dense<0.000000e+00> : vector<8x8xf32>
    %39 = tpu.matmul %34, %36, %cst_10 {dimension_numbers = #tpu.dot_dimension_numbers<[1], [1], [0], [0], [0, 0, 1, 0], [], []>} : vector<8x64xbf16>, vector<8x64xbf16>, vector<8x8xf32> -> vector<8x8xf32>
    %cst_11 = arith.constant dense<0xFF800000> : vector<8xf32>
    %40 = vector.multi_reduction <maximumf>, %39, %cst_11 [1] : vector<8x8xf32> to vector<8xf32>
    %41 = vector.shape_cast %40 : vector<8xf32> to vector<8x1xf32>
    %42 = vector.broadcast %41 : vector<8x1xf32> to vector<8x8xf32>
    %43 = arith.subf %39, %42 : vector<8x8xf32>
    %44 = math.exp %43 : vector<8x8xf32>
    %cst_12 = arith.constant dense<0.000000e+00> : vector<8xf32>
    %45 = vector.multi_reduction <add>, %44, %cst_12 [1] : vector<8x8xf32> to vector<8xf32>
    %46 = vector.shape_cast %45 : vector<8xf32> to vector<8x1xf32>
    %47 = arith.truncf %44 : vector<8x8xf32> to vector<8x8xbf16>
    %cst_13 = arith.constant dense<0.000000e+00> : vector<8x64xf32>
    %48 = tpu.matmul %47, %38, %cst_13 {dimension_numbers = #tpu.dot_dimension_numbers<[1], [0], [0], [1], [0, 0, 1, 1], [], []>} : vector<8x8xbf16>, vector<8x64xbf16>, vector<8x64xf32> -> vector<8x64xf32>
    %49 = tpu.reciprocal %46 {approx = true} : vector<8x1xf32> -> vector<8x1xf32>
    %50 = vector.broadcast %49 : vector<8x1xf32> to vector<8x64xf32>
    %51 = arith.mulf %48, %50 : vector<8x64xf32>
    %52 = vector.extract_strided_slice %11 {offsets = [0, 128], sizes = [8, 64], strides = [1, 1]} : vector<16x256xf32> to vector<8x64xf32>
    %53 = arith.truncf %52 : vector<8x64xf32> to vector<8x64xbf16>
    %54 = vector.extract_strided_slice %12 {offsets = [0, 128], sizes = [8, 64], strides = [1, 1]} : vector<16x256xf32> to vector<8x64xf32>
    %55 = arith.truncf %54 : vector<8x64xf32> to vector<8x64xbf16>
    %56 = vector.extract_strided_slice %13 {offsets = [0, 128], sizes = [8, 64], strides = [1, 1]} : vector<16x256xf32> to vector<8x64xf32>
    %57 = arith.truncf %56 : vector<8x64xf32> to vector<8x64xbf16>
    %cst_14 = arith.constant dense<0.000000e+00> : vector<8x8xf32>
    %58 = tpu.matmul %53, %55, %cst_14 {dimension_numbers = #tpu.dot_dimension_numbers<[1], [1], [0], [0], [0, 0, 1, 0], [], []>} : vector<8x64xbf16>, vector<8x64xbf16>, vector<8x8xf32> -> vector<8x8xf32>
    %cst_15 = arith.constant dense<0xFF800000> : vector<8xf32>
    %59 = vector.multi_reduction <maximumf>, %58, %cst_15 [1] : vector<8x8xf32> to vector<8xf32>
    %60 = vector.shape_cast %59 : vector<8xf32> to vector<8x1xf32>
    %61 = vector.broadcast %60 : vector<8x1xf32> to vector<8x8xf32>
    %62 = arith.subf %58, %61 : vector<8x8xf32>
    %63 = math.exp %62 : vector<8x8xf32>
    %cst_16 = arith.constant dense<0.000000e+00> : vector<8xf32>
    %64 = vector.multi_reduction <add>, %63, %cst_16 [1] : vector<8x8xf32> to vector<8xf32>
    %65 = vector.shape_cast %64 : vector<8xf32> to vector<8x1xf32>
    %66 = arith.truncf %63 : vector<8x8xf32> to vector<8x8xbf16>
    %cst_17 = arith.constant dense<0.000000e+00> : vector<8x64xf32>
    %67 = tpu.matmul %66, %57, %cst_17 {dimension_numbers = #tpu.dot_dimension_numbers<[1], [0], [0], [1], [0, 0, 1, 1], [], []>} : vector<8x8xbf16>, vector<8x64xbf16>, vector<8x64xf32> -> vector<8x64xf32>
    %68 = tpu.reciprocal %65 {approx = true} : vector<8x1xf32> -> vector<8x1xf32>
    %69 = vector.broadcast %68 : vector<8x1xf32> to vector<8x64xf32>
    %70 = arith.mulf %67, %69 : vector<8x64xf32>
    %71 = vector.extract_strided_slice %11 {offsets = [0, 192], sizes = [8, 64], strides = [1, 1]} : vector<16x256xf32> to vector<8x64xf32>
    %72 = arith.truncf %71 : vector<8x64xf32> to vector<8x64xbf16>
    %73 = vector.extract_strided_slice %12 {offsets = [0, 192], sizes = [8, 64], strides = [1, 1]} : vector<16x256xf32> to vector<8x64xf32>
    %74 = arith.truncf %73 : vector<8x64xf32> to vector<8x64xbf16>
    %75 = vector.extract_strided_slice %13 {offsets = [0, 192], sizes = [8, 64], strides = [1, 1]} : vector<16x256xf32> to vector<8x64xf32>
    %76 = arith.truncf %75 : vector<8x64xf32> to vector<8x64xbf16>
    %cst_18 = arith.constant dense<0.000000e+00> : vector<8x8xf32>
    %77 = tpu.matmul %72, %74, %cst_18 {dimension_numbers = #tpu.dot_dimension_numbers<[1], [1], [0], [0], [0, 0, 1, 0], [], []>} : vector<8x64xbf16>, vector<8x64xbf16>, vector<8x8xf32> -> vector<8x8xf32>
    %cst_19 = arith.constant dense<0xFF800000> : vector<8xf32>
    %78 = vector.multi_reduction <maximumf>, %77, %cst_19 [1] : vector<8x8xf32> to vector<8xf32>
    %79 = vector.shape_cast %78 : vector<8xf32> to vector<8x1xf32>
    %80 = vector.broadcast %79 : vector<8x1xf32> to vector<8x8xf32>
    %81 = arith.subf %77, %80 : vector<8x8xf32>
    %82 = math.exp %81 : vector<8x8xf32>
    %cst_20 = arith.constant dense<0.000000e+00> : vector<8xf32>
    %83 = vector.multi_reduction <add>, %82, %cst_20 [1] : vector<8x8xf32> to vector<8xf32>
    %84 = vector.shape_cast %83 : vector<8xf32> to vector<8x1xf32>
    %85 = arith.truncf %82 : vector<8x8xf32> to vector<8x8xbf16>
    %cst_21 = arith.constant dense<0.000000e+00> : vector<8x64xf32>
    %86 = tpu.matmul %85, %76, %cst_21 {dimension_numbers = #tpu.dot_dimension_numbers<[1], [0], [0], [1], [0, 0, 1, 1], [], []>} : vector<8x8xbf16>, vector<8x64xbf16>, vector<8x64xf32> -> vector<8x64xf32>
    %87 = tpu.reciprocal %84 {approx = true} : vector<8x1xf32> -> vector<8x1xf32>
    %88 = vector.broadcast %87 : vector<8x1xf32> to vector<8x64xf32>
    %89 = arith.mulf %86, %88 : vector<8x64xf32>
    %90 = tpu.concatenate %32, %51, %70, %89 in 1 : vector<8x64xf32>, vector<8x64xf32>, vector<8x64xf32>, vector<8x64xf32> -> vector<8x256xf32>
    %91 = vector.extract_strided_slice %11 {offsets = [8, 0], sizes = [8, 64], strides = [1, 1]} : vector<16x256xf32> to vector<8x64xf32>
    %92 = arith.truncf %91 : vector<8x64xf32> to vector<8x64xbf16>
    %93 = vector.extract_strided_slice %12 {offsets = [8, 0], sizes = [8, 64], strides = [1, 1]} : vector<16x256xf32> to vector<8x64xf32>
    %94 = arith.truncf %93 : vector<8x64xf32> to vector<8x64xbf16>
    %95 = vector.extract_strided_slice %13 {offsets = [8, 0], sizes = [8, 64], strides = [1, 1]} : vector<16x256xf32> to vector<8x64xf32>
    %96 = arith.truncf %95 : vector<8x64xf32> to vector<8x64xbf16>
    %cst_22 = arith.constant dense<0.000000e+00> : vector<8x8xf32>
    %97 = tpu.matmul %92, %94, %cst_22 {dimension_numbers = #tpu.dot_dimension_numbers<[1], [1], [0], [0], [0, 0, 1, 0], [], []>} : vector<8x64xbf16>, vector<8x64xbf16>, vector<8x8xf32> -> vector<8x8xf32>
    %cst_23 = arith.constant dense<0xFF800000> : vector<8xf32>
    %98 = vector.multi_reduction <maximumf>, %97, %cst_23 [1] : vector<8x8xf32> to vector<8xf32>
    %99 = vector.shape_cast %98 : vector<8xf32> to vector<8x1xf32>
    %100 = vector.broadcast %99 : vector<8x1xf32> to vector<8x8xf32>
    %101 = arith.subf %97, %100 : vector<8x8xf32>
    %102 = math.exp %101 : vector<8x8xf32>
    %cst_24 = arith.constant dense<0.000000e+00> : vector<8xf32>
    %103 = vector.multi_reduction <add>, %102, %cst_24 [1] : vector<8x8xf32> to vector<8xf32>
    %104 = vector.shape_cast %103 : vector<8xf32> to vector<8x1xf32>
    %105 = arith.truncf %102 : vector<8x8xf32> to vector<8x8xbf16>
    %cst_25 = arith.constant dense<0.000000e+00> : vector<8x64xf32>
    %106 = tpu.matmul %105, %96, %cst_25 {dimension_numbers = #tpu.dot_dimension_numbers<[1], [0], [0], [1], [0, 0, 1, 1], [], []>} : vector<8x8xbf16>, vector<8x64xbf16>, vector<8x64xf32> -> vector<8x64xf32>
    %107 = tpu.reciprocal %104 {approx = true} : vector<8x1xf32> -> vector<8x1xf32>
    %108 = vector.broadcast %107 : vector<8x1xf32> to vector<8x64xf32>
    %109 = arith.mulf %106, %108 : vector<8x64xf32>
    %110 = vector.extract_strided_slice %11 {offsets = [8, 64], sizes = [8, 64], strides = [1, 1]} : vector<16x256xf32> to vector<8x64xf32>
    %111 = arith.truncf %110 : vector<8x64xf32> to vector<8x64xbf16>
    %112 = vector.extract_strided_slice %12 {offsets = [8, 64], sizes = [8, 64], strides = [1, 1]} : vector<16x256xf32> to vector<8x64xf32>
    %113 = arith.truncf %112 : vector<8x64xf32> to vector<8x64xbf16>
    %114 = vector.extract_strided_slice %13 {offsets = [8, 64], sizes = [8, 64], strides = [1, 1]} : vector<16x256xf32> to vector<8x64xf32>
    %115 = arith.truncf %114 : vector<8x64xf32> to vector<8x64xbf16>
    %cst_26 = arith.constant dense<0.000000e+00> : vector<8x8xf32>
    %116 = tpu.matmul %111, %113, %cst_26 {dimension_numbers = #tpu.dot_dimension_numbers<[1], [1], [0], [0], [0, 0, 1, 0], [], []>} : vector<8x64xbf16>, vector<8x64xbf16>, vector<8x8xf32> -> vector<8x8xf32>
    %cst_27 = arith.constant dense<0xFF800000> : vector<8xf32>
    %117 = vector.multi_reduction <maximumf>, %116, %cst_27 [1] : vector<8x8xf32> to vector<8xf32>
    %118 = vector.shape_cast %117 : vector<8xf32> to vector<8x1xf32>
    %119 = vector.broadcast %118 : vector<8x1xf32> to vector<8x8xf32>
    %120 = arith.subf %116, %119 : vector<8x8xf32>
    %121 = math.exp %120 : vector<8x8xf32>
    %cst_28 = arith.constant dense<0.000000e+00> : vector<8xf32>
    %122 = vector.multi_reduction <add>, %121, %cst_28 [1] : vector<8x8xf32> to vector<8xf32>
    %123 = vector.shape_cast %122 : vector<8xf32> to vector<8x1xf32>
    %124 = arith.truncf %121 : vector<8x8xf32> to vector<8x8xbf16>
    %cst_29 = arith.constant dense<0.000000e+00> : vector<8x64xf32>
    %125 = tpu.matmul %124, %115, %cst_29 {dimension_numbers = #tpu.dot_dimension_numbers<[1], [0], [0], [1], [0, 0, 1, 1], [], []>} : vector<8x8xbf16>, vector<8x64xbf16>, vector<8x64xf32> -> vector<8x64xf32>
    %126 = tpu.reciprocal %123 {approx = true} : vector<8x1xf32> -> vector<8x1xf32>
    %127 = vector.broadcast %126 : vector<8x1xf32> to vector<8x64xf32>
    %128 = arith.mulf %125, %127 : vector<8x64xf32>
    %129 = vector.extract_strided_slice %11 {offsets = [8, 128], sizes = [8, 64], strides = [1, 1]} : vector<16x256xf32> to vector<8x64xf32>
    %130 = arith.truncf %129 : vector<8x64xf32> to vector<8x64xbf16>
    %131 = vector.extract_strided_slice %12 {offsets = [8, 128], sizes = [8, 64], strides = [1, 1]} : vector<16x256xf32> to vector<8x64xf32>
    %132 = arith.truncf %131 : vector<8x64xf32> to vector<8x64xbf16>
    %133 = vector.extract_strided_slice %13 {offsets = [8, 128], sizes = [8, 64], strides = [1, 1]} : vector<16x256xf32> to vector<8x64xf32>
    %134 = arith.truncf %133 : vector<8x64xf32> to vector<8x64xbf16>
    %cst_30 = arith.constant dense<0.000000e+00> : vector<8x8xf32>
    %135 = tpu.matmul %130, %132, %cst_30 {dimension_numbers = #tpu.dot_dimension_numbers<[1], [1], [0], [0], [0, 0, 1, 0], [], []>} : vector<8x64xbf16>, vector<8x64xbf16>, vector<8x8xf32> -> vector<8x8xf32>
    %cst_31 = arith.constant dense<0xFF800000> : vector<8xf32>
    %136 = vector.multi_reduction <maximumf>, %135, %cst_31 [1] : vector<8x8xf32> to vector<8xf32>
    %137 = vector.shape_cast %136 : vector<8xf32> to vector<8x1xf32>
    %138 = vector.broadcast %137 : vector<8x1xf32> to vector<8x8xf32>
    %139 = arith.subf %135, %138 : vector<8x8xf32>
    %140 = math.exp %139 : vector<8x8xf32>
    %cst_32 = arith.constant dense<0.000000e+00> : vector<8xf32>
    %141 = vector.multi_reduction <add>, %140, %cst_32 [1] : vector<8x8xf32> to vector<8xf32>
    %142 = vector.shape_cast %141 : vector<8xf32> to vector<8x1xf32>
    %143 = arith.truncf %140 : vector<8x8xf32> to vector<8x8xbf16>
    %cst_33 = arith.constant dense<0.000000e+00> : vector<8x64xf32>
    %144 = tpu.matmul %143, %134, %cst_33 {dimension_numbers = #tpu.dot_dimension_numbers<[1], [0], [0], [1], [0, 0, 1, 1], [], []>} : vector<8x8xbf16>, vector<8x64xbf16>, vector<8x64xf32> -> vector<8x64xf32>
    %145 = tpu.reciprocal %142 {approx = true} : vector<8x1xf32> -> vector<8x1xf32>
    %146 = vector.broadcast %145 : vector<8x1xf32> to vector<8x64xf32>
    %147 = arith.mulf %144, %146 : vector<8x64xf32>
    %148 = vector.extract_strided_slice %11 {offsets = [8, 192], sizes = [8, 64], strides = [1, 1]} : vector<16x256xf32> to vector<8x64xf32>
    %149 = arith.truncf %148 : vector<8x64xf32> to vector<8x64xbf16>
    %150 = vector.extract_strided_slice %12 {offsets = [8, 192], sizes = [8, 64], strides = [1, 1]} : vector<16x256xf32> to vector<8x64xf32>
    %151 = arith.truncf %150 : vector<8x64xf32> to vector<8x64xbf16>
    %152 = vector.extract_strided_slice %13 {offsets = [8, 192], sizes = [8, 64], strides = [1, 1]} : vector<16x256xf32> to vector<8x64xf32>
    %153 = arith.truncf %152 : vector<8x64xf32> to vector<8x64xbf16>
    %cst_34 = arith.constant dense<0.000000e+00> : vector<8x8xf32>
    %154 = tpu.matmul %149, %151, %cst_34 {dimension_numbers = #tpu.dot_dimension_numbers<[1], [1], [0], [0], [0, 0, 1, 0], [], []>} : vector<8x64xbf16>, vector<8x64xbf16>, vector<8x8xf32> -> vector<8x8xf32>
    %cst_35 = arith.constant dense<0xFF800000> : vector<8xf32>
    %155 = vector.multi_reduction <maximumf>, %154, %cst_35 [1] : vector<8x8xf32> to vector<8xf32>
    %156 = vector.shape_cast %155 : vector<8xf32> to vector<8x1xf32>
    %157 = vector.broadcast %156 : vector<8x1xf32> to vector<8x8xf32>
    %158 = arith.subf %154, %157 : vector<8x8xf32>
    %159 = math.exp %158 : vector<8x8xf32>
    %cst_36 = arith.constant dense<0.000000e+00> : vector<8xf32>
    %160 = vector.multi_reduction <add>, %159, %cst_36 [1] : vector<8x8xf32> to vector<8xf32>
    %161 = vector.shape_cast %160 : vector<8xf32> to vector<8x1xf32>
    %162 = arith.truncf %159 : vector<8x8xf32> to vector<8x8xbf16>
    %cst_37 = arith.constant dense<0.000000e+00> : vector<8x64xf32>
    %163 = tpu.matmul %162, %153, %cst_37 {dimension_numbers = #tpu.dot_dimension_numbers<[1], [0], [0], [1], [0, 0, 1, 1], [], []>} : vector<8x8xbf16>, vector<8x64xbf16>, vector<8x64xf32> -> vector<8x64xf32>
    %164 = tpu.reciprocal %161 {approx = true} : vector<8x1xf32> -> vector<8x1xf32>
    %165 = vector.broadcast %164 : vector<8x1xf32> to vector<8x64xf32>
    %166 = arith.mulf %163, %165 : vector<8x64xf32>
    %167 = tpu.concatenate %109, %128, %147, %166 in 1 : vector<8x64xf32>, vector<8x64xf32>, vector<8x64xf32>, vector<8x64xf32> -> vector<8x256xf32>
    %168 = tpu.concatenate %90, %167 in 0 : vector<8x256xf32>, vector<8x256xf32> -> vector<16x256xf32>
    %c0_38 = arith.constant 0 : index
    %c0_39 = arith.constant 0 : index
    %c0_40 = arith.constant 0 : index
    %169 = vector.load %arg4[%c0_38, %c0_39, %c0_40] : memref<1x256x32xf32, #tpu.memory_space<vmem>>, vector<1x256x32xf32>
    %170 = vector.shape_cast %169 : vector<1x256x32xf32> to vector<256x32xf32>
    %171 = arith.truncf %170 : vector<256x32xf32> to vector<256x32xbf16>
    %c0_41 = arith.constant 0 : index
    %c0_42 = arith.constant 0 : index
    %172 = vector.load %arg7[%c0_41, %c0_42] : memref<16x32xf32, #tpu.memory_space<vmem>>, vector<16x32xf32>
    %173 = arith.truncf %168 : vector<16x256xf32> to vector<16x256xbf16>
    %cst_43 = arith.constant dense<0.000000e+00> : vector<16x32xf32>
    %174 = tpu.matmul %173, %171, %cst_43 {dimension_numbers = #tpu.dot_dimension_numbers<[1], [0], [0], [1], [0, 0, 1, 1], [], []>} : vector<16x256xbf16>, vector<256x32xbf16>, vector<16x32xf32> -> vector<16x32xf32>
    %175 = arith.addf %172, %174 : vector<16x32xf32>
    %c0_44 = arith.constant 0 : index
    %c0_45 = arith.constant 0 : index
    %176 = vector.load %arg7[%c0_44, %c0_45] : memref<16x32xf32, #tpu.memory_space<vmem>>, vector<16x32xf32>
    tpu.vector_store %arg7[%c0_44, %c0_45], %175 {strides = array<i32>} : memref<16x32xf32, #tpu.memory_space<vmem>>, vector<16x32xf32>,
    %c1_i32 = arith.constant 1 : i32
    %177 = arith.cmpi eq, %arg1, %c1_i32 : i32
    %178 = arith.extui %177 : i1 to i32
    %c0_i32_46 = arith.constant 0 : i32
    %179 = arith.cmpi ne, %178, %c0_i32_46 : i32
    scf.if %179 {
      %c0_47 = arith.constant 0 : index
      %c0_48 = arith.constant 0 : index
      %180 = vector.load %arg7[%c0_47, %c0_48] : memref<16x32xf32, #tpu.memory_space<vmem>>, vector<16x32xf32>
      %c0_49 = arith.constant 0 : index
      %c0_50 = arith.constant 0 : index
      %181 = vector.load %arg5[%c0_49, %c0_50] : memref<1x32xf32, #tpu.memory_space<vmem>>, vector<1x32xf32>
      %182 = vector.broadcast %181 : vector<1x32xf32> to vector<16x32xf32>
      %183 = arith.addf %180, %182 : vector<16x32xf32>
      %c0_51 = arith.constant 0 : index
      %c0_52 = arith.constant 0 : index
      %184 = vector.load %arg6[%c0_51, %c0_52] : memref<16x32xf32, #tpu.memory_space<vmem>>, vector<16x32xf32>
      tpu.vector_store %arg6[%c0_51, %c0_52], %183 {strides = array<i32>} : memref<16x32xf32, #tpu.memory_space<vmem>>, vector<16x32xf32>,
    } else {
    }
    return
  }
  func.func @transform_0(%arg0: i32, %arg1: i32) -> (i32, i32) {
    %c0_i32 = arith.constant 0 : i32
    %c0_i32_0 = arith.constant 0 : i32
    return %arg0, %c0_i32 : i32, i32
  }
  func.func @transform_1(%arg0: i32, %arg1: i32) -> (i32, i32, i32) {
    %c0_i32 = arith.constant 0 : i32
    %c0_i32_0 = arith.constant 0 : i32
    %c0_i32_1 = arith.constant 0 : i32
    return %arg1, %c0_i32, %c0_i32_0 : i32, i32, i32
  }
  func.func @transform_2(%arg0: i32, %arg1: i32) -> (i32, i32, i32) {
    %c0_i32 = arith.constant 0 : i32
    %c0_i32_0 = arith.constant 0 : i32
    %c0_i32_1 = arith.constant 0 : i32
    return %arg1, %c0_i32, %c0_i32_0 : i32, i32, i32
  }
  func.func @transform_3(%arg0: i32, %arg1: i32) -> (i32, i32) {
    %c0_i32 = arith.constant 0 : i32
    %c0_i32_0 = arith.constant 0 : i32
    %c0_i32_1 = arith.constant 0 : i32
    return %c0_i32, %c0_i32_0 : i32, i32
  }
  func.func @transform_4(%arg0: i32, %arg1: i32) -> (i32, i32) {
    %c0_i32 = arith.constant 0 : i32
    %c0_i32_0 = arith.constant 0 : i32
    return %arg0, %c0_i32 : i32, i32
  }
}

</mosaic_0001>

<bundles_post_ra>
// kernel: attention_fn.1
= control target key start
LH: loop header
LB: loop body
LE: loop exit
PB: predicated region body
PF: predicated region fallthrough
CT: control target
= control target key end

     0   :  { %9 = vsyncpa [#allocation4], 0  ;;  %s1885_s15 = smov 0   ;;  %s1887_s16 = smov 0   ;;  %s2168_s0 = inlined_call_operand.vmem [shape: f32[16,32], index: 0, kind: input, shape index: {}]   ;;  %s2169_s1 = inlined_call_operand.vmem [shape: f32[2,32,768], index: 1, kind: input, shape index: {}]   ;;  %s2170_s2 = inlined_call_operand.vmem [shape: f32[2,256,32], index: 2, kind: input, shape index: {}]   ;;  %s2171_s3 = inlined_call_operand.vmem [shape: f32[1,32], index: 3, kind: input, shape index: {}]   ;;  %s2172_s4 = inlined_call_operand.hbm [shape: f32[16,32], index: 4, kind: output, shape index: {}]  }
   0x1   :  { %s1889_s17 = smov 0  }
   0x2 LB: > { %s1534_s18 = sadd.s32 4294967295, %s1850_s17   ;;  %s24_s19 = sadd.s32 1, %s1846_s16  ;;  %s1850_s17 = sphi %s1889_s17, %s15_s17   ;;  %s1846_s16 = sphi %s1887_s16, %s2175_s16   ;;  %s1842_s15 = sphi %s1885_s15, %s2174_s15  }
   0x3   : > { %p25_p0 = scmp.ge.s32.totalorder %s24_s19, 2  ;;  %p1538_p1 = scmp.ge.s32.totalorder %s1850_s17, 1 }
   0x4   : > { %p196_p2 = scmp.lt.s32.totalorder %s1850_s17, 3 }
   0x5   : > { %s2177_s19 = smov (%p25_p0, %s24_s19), 0 }
   0x6   : > { %p197_p3 = pnand %p1538_p1, %p196_p2 }
   0x7   : > { %p233_p4 = scmp.lt.s32.totalorder (!%p197_p3), %s1842_s15, 1  ;;  %p1542_p5 = scmp.ne.s32.totalorder (!%p197_p3), %s1842_s15, 0 }
   0x8   : > { %200 = sbr.rel (%p197_p3) target bundleno = 1335 (0x537), region = 36 }
   0xd   : > { %s234_s20 = scalar_select %p233_p4, %s1842_s15, 1 }
   0xe   : > { %248 = sbr.rel (%p1542_p5) target bundleno = 21 (0x15), region = 40 }
   0xf   : > { %s1719_s21 = smul.u32 192, %s234_s20  ;;  %s1568_s22 = sshll.u32 %s234_s20, 8 }
  0x10   : > { %s1911_s25 = scalar_lea.vmem %s2170_s2, %s1568_s22 }
  0x11   : > { %s1916_s28 = scalar_lea.vmem %s2169_s1, %s1719_s21 }
  0x13   : > { %vm249_vm0 = vcmask 261120   ;;  %v1852_v0 = vmov 0.0  }
  0x14   : > { %250 = vst.msk [vmem:[#allocation2] sm:$0xff] %vm249_vm0, %v1852_v0  ;;  %251 = vst.msk [vmem:[#allocation2 + $0x8] sm:$0xff] %vm249_vm0, %v1852_v0 }
  0x15 PF: > { %v268_v1 = vld [vmem:[%s1916_s28 + $0x68] sm:$0xff]  ;;  %v274_v2 = vld [vmem:[%s1916_s28 + $0x98] sm:$0xff]  ;;  %v267_v3 = vld [vmem:[%s1916_s28 + $0x60] sm:$0xff]  ;;  %v1853_v8 = vmov 0   ;;  %vm291_vm1 = vcmask 261120   ;;  %v1854_v29 = vmov 0.0  }
  0x16   : > { %v286_v4 = vpack.c.bf16 %v274_v2, %v268_v1  ;;  %v273_v5 = vld [vmem:[%s1916_s28 + $0x90] sm:$0xff]  ;;  %v256_v6 = vld [vmem:[%s1916_s28 + $0x8] sm:$0xff]  ;;  %v262_v7 = vld [vmem:[%s1916_s28 + $0x38] sm:$0xff]  ;;  %327 = vmatprep.mubr.bf16.mxu0 %v1853_v8  ;;  %1623 = vmatprep.subr.bf16.mxu1 %v1854_v29  ;;  %vm1855_vm2 = vmmov 0   ;;  %vm431_vm3 = vcmask 523264   ;;  %s1856_s7 = smov 64  }
  0x17   : > { %v285_v9 = vpack.c.bf16 %v273_v5, %v267_v3  ;;  %v280_v10 = vpack.c.bf16 %v262_v7, %v256_v6  ;;  %v255_v11 = vld [vmem:[%s1916_s28] sm:$0xff]  ;;  %v261_v12 = vld [vmem:[%s1916_s28 + $0x30] sm:$0xff]  ;;  %v270_v13 = vld [vmem:[%s1916_s28 + $0x78] sm:$0xff]  ;;  %1625 = vmatprep.mubr.msk.bf16.mxu1 %vm1855_vm2, %v1854_v29  ;;  %vm492_vm4 = vcmask 1043456   ;;  %vm478_vm5 = vcmask 64512   ;;  %p1562_p6 = scmp.ne.s32.totalorder %s1842_s15, 1 }
  0x18   : > { %307 = vmatprep.subr.bf16.mxu0 %v286_v4  ;;  %v276_v14 = vld [vmem:[%s1916_s28 + $0xa8] sm:$0xff]  ;;  %v279_v15 = vpack.c.bf16 %v261_v12, %v255_v11  ;;  %v252_v16 = vld [vmem:[%s2168_s0] sm:$0xff]  ;;  %v269_v19 = vld [vmem:[%s1916_s28 + $0x70] sm:$0xff] }
  0x19   : > { %308 = vmatpush1.bf16.msra.mxu0 %v285_v9  ;;  %v253_v17 = vld [vmem:[%s2168_s0 + $0x8] sm:$0xff]  ;;  %v288_v18 = vpack.c.bf16 %v276_v14, %v270_v13  ;;  %v275_v20 = vld [vmem:[%s1916_s28 + $0xa0] sm:$0xff]  ;;  %v258_v21 = vld [vmem:[%s1916_s28 + $0x18] sm:$0xff] }
  0x1a   : > { %309 = vmatprep.subr.bf16.mxu0 %v280_v10  ;;  %v264_v22 = vld [vmem:[%s1916_s28 + $0x48] sm:$0xff]  ;;  %v254_v23 = vpack.c.bf16 %v253_v17, %v252_v16  ;;  %v287_v24 = vpack.c.bf16 %v275_v20, %v269_v19  ;;  %v257_v26 = vld [vmem:[%s1916_s28 + $0x10] sm:$0xff]  ;;  %v263_v27 = vld [vmem:[%s1916_s28 + $0x40] sm:$0xff] }
  0x1b   : > { %v282_v25 = vpack.c.bf16 %v264_v22, %v258_v21  ;;  %v281_v28 = vpack.c.bf16 %v263_v27, %v257_v26  ;;  %v272_v32 = vld [vmem:[%s1916_s28 + $0x88] sm:$0xff]  ;;  %v278_v33 = vld [vmem:[%s1916_s28 + $0xb8] sm:$0xff]  ;;  %v271_v36 = vld [vmem:[%s1916_s28 + $0x80] sm:$0xff] }
  0x1c   : > { %v290_v35 = vpack.c.bf16 %v278_v33, %v272_v32  ;;  %v277_v37 = vld [vmem:[%s1916_s28 + $0xb0] sm:$0xff]  ;;  %v260_v40 = vld [vmem:[%s1916_s28 + $0x28] sm:$0xff]  ;;  %v266_v41 = vld [vmem:[%s1916_s28 + $0x58] sm:$0xff] }
  0x1d   : > { %310 = vmatpush1.bf16.msra.mxu0 %v279_v15  ;;  %v289_v38 = vpack.c.bf16 %v277_v37, %v271_v36  ;;  %v284_v43 = vpack.c.bf16 %v266_v41, %v260_v40  ;;  %v259_v44 = vld [vmem:[%s1916_s28 + $0x20] sm:$0xff]  ;;  %v265_v45 = vld [vmem:[%s1916_s28 + $0x50] sm:$0xff] }
  0x1e   : > { %350 = vmatprep.subr.bf16.mxu0 %v288_v18  ;;  %v283_v48 = vpack.c.bf16 %v265_v45, %v259_v44 }
  0x20   : > { %1543 = vmatmul.mubr.msk.bf16.vlgmr.msra.gmra.mxu0 %vm291_vm1, %v254_v23 }
  0x21   : > { %351 = vmatpush1.bf16.msra.mxu0 %v287_v24  ;;  %370 = vmatprep.mubr.bf16.mxu0 %v1853_v8 }
  0x22   : > { %352 = vmatprep.subr.bf16.mxu0 %v282_v25 }
  0x25   : > { %353 = vmatpush1.bf16.msra.mxu0 %v281_v28 }
  0x26   : > { %393 = vmatprep.subr.bf16.mxu0 %v290_v35 }
  0x28   : > { %1544 = vmatmul.mubr.msk.bf16.vlgmr.msra.gmra.mxu0 %vm291_vm1, %v254_v23 }
  0x29   : > { %413 = vmatprep.mubr.bf16.mxu0 %v1853_v8  ;;  %394 = vmatpush1.bf16.msra.mxu0 %v289_v38 }
  0x2a   : > { %395 = vmatprep.subr.bf16.mxu0 %v284_v43 }
  0x2d   : > { %396 = vmatpush1.bf16.msra.mxu0 %v283_v48 }
  0x2e   : > { %1629 = vmatprep.subr.bf16.mxu0 %v1854_v29 }
  0x30   : > { %1545 = vmatmul.mubr.msk.bf16.vlgmr.msra.gmra.mxu0 %vm291_vm1, %v254_v23 }
  0x31   : > { %1631 = vmatprep.mubr.msk.bf16.mxu0 %vm1855_vm2, %v1854_v29 }
  0xe0   : > { %v329_v30 = vpop.f32.mrf.mxu0 }
  0xe1   : > { %v424_v46 = vmul.f32 0.125, %v329_v30 }
  0xe2   : > { %v331_v31 = vpop.f32.mrf.mxu0 }
  0xe3   : > { %v425_v50 = vmul.f32 0.125, %v331_v31  ;;  %v428_v53 = vpack.c.bf16 %v424_v46, %v424_v46 }
  0xe4   : > { %v333_v34 = vpop.f32.mrf.mxu0 }
  0xe5   : > { %v651_v55 = vpack.c.bf16 %v425_v50, %v425_v50  ;;  %v426_v56 = vmul.f32 0.125, %v333_v34 }
  0xe6   : > { %v335_v39 = vpop.f32.mrf.mxu0 }
  0xe7   : > { %v881_v59 = vpack.c.bf16 %v426_v56, %v426_v56  ;;  %v427_v60 = vmul.f32 0.125, %v335_v39 }
  0xe8   : > { %v372_v42 = vpop.f32.mrf.mxu0 }
  0xe9   : > { %v429_v47 = vpack.c.bf16 %v372_v42, %v372_v42  ;;  %v1101_v62 = vpack.c.bf16 %v427_v60, %v427_v60 }
  0xea   : > { %v374_v49 = vpop.f32.mrf.mxu0 }
  0xeb   : > { %v652_v51 = vpack.c.bf16 %v374_v49, %v374_v49  ;;  %542 = vrot.lane.b32.xlu0 %v429_v47, %s1856_s7  ;;  %v436_v52 = vsel %vm431_vm3, %v429_v47, 0 }
  0xec   : > { %1624 = vmatpush3.bf16.xpose.msra.mxu1 %v436_v52  ;;  %v376_v54 = vpop.f32.mrf.mxu0 }
  0xed   : > { %762 = vrot.lane.b32.xlu1 %v652_v51, %s1856_s7  ;;  %1635 = vmatprep.subr.bf16.mxu1 %v1854_v29  ;;  %v882_v57 = vpack.c.bf16 %v376_v54, %v376_v54  ;;  %v658_v2 = vsel %vm431_vm3, %v652_v51, 0 }
  0xee   : > { %v378_v58 = vpop.f32.mrf.mxu0 }
  0xef   : > { %539 = vrot.lane.b32.xlu0 %v428_v53, %s1856_s7  ;;  %v1102_v61 = vpack.c.bf16 %v378_v58, %v378_v58  ;;  %v888_v6 = vsel %vm431_vm3, %v882_v57, 0 }
  0xf0   : > { %v415_v14 = vpop.f32.mrf.mxu0 }
  0xf1   : > { %759 = vrot.lane.b32.xlu1 %v651_v55, %s1856_s7  ;;  %v1108_v10 = vsel %vm431_vm3, %v1102_v61, 0  ;;  %v430_v15 = vpack.c.bf16 %v415_v14, %v415_v14 }
  0xf2   : > { %v417_v33 = vpop.f32.mrf.mxu0 }
  0xf3   : > { %1626 = vmatmul.mubr.msk.bf16.vlgmr.msra.gmra.mxu1 %vm431_vm3, %v428_v53  ;;  %992 = vrot.lane.b32.xlu0 %v882_v57, %s1856_s7  ;;  %v494_v16 = vsel %vm492_vm4, %v430_v15, 0  ;;  %v2008_v35 = vpack.c.bf16 %v417_v33, %v417_v33 }
  0xf4   : > { %1637 = vmatprep.mubr.msk.bf16.mxu1 %vm1855_vm2, %v1854_v29  ;;  %1630 = vmatpush3.bf16.msra.mxu0 %v494_v16 }
  0xf5   : > { %989 = vrot.lane.b32.xlu1 %v881_v59, %s1856_s7  ;;  %1641 = vmatprep.subr.bf16.mxu0 %v1854_v29 }
  0xf7   : > { %1212 = vrot.lane.b32.xlu0 %v1102_v61, %s1856_s7 }
  0xf9   : > { %1209 = vrot.lane.b32.xlu1 %v1101_v62, %s1856_s7 }
 0x15d   : > { %v543_v63 = vpop.permute.xlu0 %542 }
 0x15e   : > { %v548_v0 = vsel %vm431_vm3, %v543_v63, 0 }
 0x15f   : > { %1636 = vmatpush3.bf16.xpose.msra.mxu1 %v548_v0  ;;  %v763_v3 = vpop.permute.xlu1 %762 }
 0x160   : > { %1647 = vmatprep.subr.bf16.mxu1 %v1854_v29  ;;  %v768_v4 = vsel %vm431_vm3, %v763_v3, 0 }
 0x161   : > { %v540_v1 = vpop.permute.xlu0 %539 }
 0x163   : > { %v760_v5 = vpop.permute.xlu1 %759 }
 0x165   : > { %v993_v7 = vpop.permute.xlu0 %992 }
 0x166   : > { %1638 = vmatmul.mubr.msk.bf16.vlgmr.msra.gmra.mxu1 %vm431_vm3, %v540_v1  ;;  %v998_v8 = vsel %vm431_vm3, %v993_v7, 0  ;;  %v419_v1 = vpop.f32.mrf.mxu0 }
 0x167   : > { %1648 = vmatpush3.bf16.xpose.msra.mxu1 %v658_v2  ;;  %1649 = vmatprep.mubr.msk.bf16.mxu1 %vm1855_vm2, %v1854_v29  ;;  %v990_v9 = vpop.permute.xlu1 %989  ;;  %v883_v2 = vpack.c.bf16 %v419_v1, %v419_v1  ;;  %v1345_v1 = vld [vmem:[%s1911_s25 + $0x70] sm:$0xff] }
 0x168   : > { %1659 = vmatprep.subr.bf16.mxu1 %v1854_v29  ;;  %v421_v3 = vpop.f32.mrf.mxu0 }
 0x169   : > { %v1213_v11 = vpop.permute.xlu0 %1212 }
 0x16a   : > { %v1218_v12 = vsel %vm431_vm3, %v1213_v11, 0 }
 0x16b   : > { %v1210_v13 = vpop.permute.xlu1 %1209 }
 0x16e   : > { %1650 = vmatmul.mubr.msk.bf16.vlgmr.msra.gmra.mxu1 %vm431_vm3, %v651_v55 }
 0x16f   : > { %1660 = vmatpush3.bf16.xpose.msra.mxu1 %v768_v4  ;;  %1661 = vmatprep.mubr.msk.bf16.mxu1 %vm1855_vm2, %v1854_v29  ;;  %v2034_v4 = vpack.c.bf16 %v421_v3, %v421_v3  ;;  %v1346_v3 = vld [vmem:[%s1911_s25 + $0x78] sm:$0xff] }
 0x170   : > { %1671 = vmatprep.subr.bf16.mxu1 %v1854_v29 }
 0x176   : > { %1662 = vmatmul.mubr.msk.bf16.vlgmr.msra.gmra.mxu1 %vm431_vm3, %v760_v5 }
 0x177   : > { %1672 = vmatpush3.bf16.xpose.msra.mxu1 %v888_v6  ;;  %1673 = vmatprep.mubr.msk.bf16.mxu1 %vm1855_vm2, %v1854_v29 }
 0x178   : > { %1683 = vmatprep.subr.bf16.mxu1 %v1854_v29 }
 0x17e   : > { %1674 = vmatmul.mubr.msk.bf16.vlgmr.msra.gmra.mxu1 %vm431_vm3, %v881_v59 }
 0x17f   : > { %1684 = vmatpush3.bf16.xpose.msra.mxu1 %v998_v8  ;;  %1685 = vmatprep.mubr.msk.bf16.mxu1 %vm1855_vm2, %v1854_v29 }
 0x180   : > { %1695 = vmatprep.subr.bf16.mxu1 %v1854_v29 }
 0x186   : > { %1686 = vmatmul.mubr.msk.bf16.vlgmr.msra.gmra.mxu1 %vm431_vm3, %v990_v9 }
 0x187   : > { %1696 = vmatpush3.bf16.xpose.msra.mxu1 %v1108_v10  ;;  %1697 = vmatprep.mubr.msk.bf16.mxu1 %vm1855_vm2, %v1854_v29 }
 0x188   : > { %1707 = vmatprep.subr.bf16.mxu1 %v1854_v29 }
 0x18e   : > { %1698 = vmatmul.mubr.msk.bf16.vlgmr.msra.gmra.mxu1 %vm431_vm3, %v1101_v62 }
 0x18f   : > { %1708 = vmatpush3.bf16.xpose.msra.mxu1 %v1218_v12  ;;  %1709 = vmatprep.mubr.msk.bf16.mxu1 %vm1855_vm2, %v1854_v29 }
 0x196   : > { %1710 = vmatmul.mubr.msk.bf16.vlgmr.msra.gmra.mxu1 %vm431_vm3, %v1210_v13 }
 0x1b3   : > { %v472_v17 = vpop.f32.mrf.mxu1 }
 0x1b4   : > { %v479_v18 = vsel %vm478_vm5, %v472_v17, -inf }
 0x1b5   : > { %v1627_v19 = vpop.f32.mrf.mxu1  ;;  %480 = vmax.xlane.f32.xlu0 %v479_v18 }
 0x1b6   : > { %v714_v19 = vsel %vm492_vm4, %v2008_v35, 0 }
 0x1b7   : > { %v475_v20 = vpop.f32.mrf.mxu1 }
 0x1b9   : > { %v1628_v21 = vpop.f32.mrf.mxu1 }
 0x226   : > { %v584_v22 = vpop.f32.mrf.mxu1 }
 0x227   : > { %v590_v23 = vsel %vm478_vm5, %v584_v22, -inf }
 0x228   : > { %v1639_v24 = vpop.f32.mrf.mxu1  ;;  %591 = vmax.xlane.f32.xlu1 %v590_v23 }
 0x22a   : > { %v587_v25 = vpop.f32.mrf.mxu1 }
 0x22c   : > { %v1640_v26 = vpop.f32.mrf.mxu1 }
 0x22e   : > { %v694_v27 = vpop.f32.mrf.mxu1 }
 0x22f   : > { %v700_v28 = vsel %vm478_vm5, %v694_v27, -inf }
 0x230   : > { %v1651_v30 = vpop.f32.mrf.mxu1  ;;  %701 = vmax.xlane.f32.xlu0 %v700_v28  ;;  %v944_v28 = vsel %vm492_vm4, %v883_v2, 0 }
 0x232   : > { %v697_v31 = vpop.f32.mrf.mxu1 }
 0x234   : > { %v1652_v32 = vpop.f32.mrf.mxu1 }
 0x236   : > { %v804_v34 = vpop.f32.mrf.mxu1 }
 0x237   : > { %v810_v36 = vsel %vm478_vm5, %v804_v34, -inf }
 0x238   : > { %v1663_v37 = vpop.f32.mrf.mxu1  ;;  %811 = vmax.xlane.f32.xlu0 %v810_v36 }
 0x239   : > { %821 = vrot.lane.b32.xlu1 %v2008_v35, %s1856_s7 }
 0x23a   : > { %v807_v38 = vpop.f32.mrf.mxu1 }
 0x23c   : > { %v1664_v39 = vpop.f32.mrf.mxu1 }
 0x23e   : > { %v2013_v40 = vpop.f32.mrf.mxu1  ;;  %v481_v41 = vpop.xlane.xlu0 %480 }
 0x23f   : > { %v482_v42 = vsub.f32 %v472_v17, %v481_v41  ;;  %v930_v61 = vsel %vm478_vm5, %v2013_v40, -inf }
 0x240   : > { %v1675_v43 = vpop.f32.mrf.mxu1 }
 0x241   : > { %v483_v44 = vmul.f32 1.442695, %v482_v42 }
 0x242   : > { %v927_v45 = vpop.f32.mrf.mxu1 }
 0x243   : > { %1768 = vpow2.f32 %v483_v44 }
 0x244   : > { %v1676_v46 = vpop.f32.mrf.mxu1 }
 0x246   : > { %v2015_v47 = vpop.f32.mrf.mxu1 }
 0x247   : > { %v1040_v62 = vsel %vm478_vm5, %v2015_v47, -inf }
 0x248   : > { %v1687_v48 = vpop.f32.mrf.mxu1 }
 0x249   : > { %v1164_v48 = vsel %vm492_vm4, %v2034_v4, 0 }
 0x24a   : > { %v1037_v49 = vpop.f32.mrf.mxu1 }
 0x24c   : > { %v1688_v50 = vpop.f32.mrf.mxu1 }
 0x24e   : > { %v2017_v51 = vpop.f32.mrf.mxu1  ;;  %601 = vrot.lane.b32.xlu0 %v430_v15, %s1856_s7 }
 0x24f   : > { %v1150_v63 = vsel %vm478_vm5, %v2017_v51, -inf }
 0x250   : > { %v1769_v52 = vpop.eup %1768  ;;  %v1699_v53 = vpop.f32.mrf.mxu1 }
 0x251   : > { %v488_v54 = vpack.c.bf16 %v1769_v52, %v1769_v52  ;;  %v485_v26 = vsel %vm478_vm5, %v1769_v52, 0.0 }
 0x252   : > { %v1147_v55 = vpop.f32.mrf.mxu1 }
 0x253   : > { %1632 = vmatmul.mubr.msk.bf16.vlgmr.msra.gmra.mxu0 %vm478_vm5, %v488_v54 }
 0x254   : > { %v1700_v56 = vpop.f32.mrf.mxu1  ;;  %1643 = vmatprep.mubr.msk.bf16.mxu0 %vm1855_vm2, %v1854_v29 }
 0x256   : > { %v2023_v57 = vpop.f32.mrf.mxu1 }
 0x257   : > { %v1260_v0 = vsel %vm478_vm5, %v2023_v57, -inf }
 0x258   : > { %v1711_v58 = vpop.f32.mrf.mxu1 }
 0x25a   : > { %v1257_v59 = vpop.f32.mrf.mxu1 }
 0x25c   : > { %v1712_v60 = vpop.f32.mrf.mxu1 }
 0x25d   : > { %931 = vmax.xlane.f32.xlu1 %v930_v61 }
 0x261   : > { %1041 = vmax.xlane.f32.xlu1 %v1040_v62 }
 0x265   : > { %1151 = vmax.xlane.f32.xlu1 %v1150_v63  ;;  %v1361_v63 = vld [vmem:[%s1911_s25 + $0xf0] sm:$0xff] }
 0x26d   : > { %1261 = vmax.xlane.f32.xlu0 %v1260_v0  ;;  %v1362_v0 = vld [vmem:[%s1911_s25 + $0xf8] sm:$0xff] }
 0x276   : > { %1051 = vrot.lane.b32.xlu1 %v883_v2, %s1856_s7  ;;  %v1378_v2 = vpack.c.bf16 %v1362_v0, %v1361_v63  ;;  %v1333_v0 = vld [vmem:[%s1911_s25 + $0x10] sm:$0xff] }
 0x278   : > { %1601 = vmatprep.subr.bf16.mxu1 %v1378_v2 }
 0x27a   : > { %1271 = vrot.lane.b32.xlu1 %v2034_v4, %s1856_s7  ;;  %v1359_v4 = vld [vmem:[%s1911_s25 + $0xe0] sm:$0xff] }
 0x2b1   : > { %v592_v5 = vpop.xlane.xlu1 %591 }
 0x2b2   : > { %v593_v6 = vsub.f32 %v584_v22, %v592_v5  ;;  %v1360_v5 = vld [vmem:[%s1911_s25 + $0xe8] sm:$0xff] }
 0x2b4   : > { %v594_v7 = vmul.f32 1.442695, %v593_v6  ;;  %v1370_v6 = vpack.c.bf16 %v1346_v3, %v1345_v1  ;;  %v1334_v1 = vld [vmem:[%s1911_s25 + $0x18] sm:$0xff] }
 0x2b5   : > { %v822_v21 = vpop.permute.xlu1 %821 }
 0x2b6   : > { %1770 = vpow2.f32 %v594_v7  ;;  %v827_v23 = vsel %vm492_vm4, %v822_v21, 0  ;;  %v1377_v7 = vpack.c.bf16 %v1360_v5, %v1359_v4  ;;  %1602 = vmatpush3.bf16.msra.mxu1 %v1370_v6  ;;  %v1364_v5 = vpack.c.bf16 %v1334_v1, %v1333_v0 }
 0x2b8   : > { %1603 = vmatprep.subr.bf16.mxu1 %v1377_v7 }
 0x2b9   : > { %v702_v8 = vpop.xlane.xlu0 %701 }
 0x2ba   : > { %v703_v9 = vsub.f32 %v694_v27, %v702_v8  ;;  %v1343_v8 = vld [vmem:[%s1911_s25 + $0x60] sm:$0xff] }
 0x2bc   : > { %v704_v10 = vmul.f32 1.442695, %v703_v9  ;;  %v1344_v9 = vld [vmem:[%s1911_s25 + $0x68] sm:$0xff] }
 0x2be   : > { %1772 = vpow2.f32 %v704_v10  ;;  %v1357_v10 = vld [vmem:[%s1911_s25 + $0xd0] sm:$0xff] }
 0x2c1   : > { %v812_v11 = vpop.xlane.xlu0 %811 }
 0x2c2   : > { %v813_v12 = vsub.f32 %v804_v34, %v812_v11  ;;  %v1358_v11 = vld [vmem:[%s1911_s25 + $0xd8] sm:$0xff] }
 0x2c3   : > { %v1771_v13 = vpop.eup %1770 }
 0x2c4   : > { %v814_v14 = vmul.f32 1.442695, %v813_v12  ;;  %v596_v15 = vsel %vm478_vm5, %v1771_v13, 0.0  ;;  %v599_v18 = vpack.c.bf16 %v1771_v13, %v1771_v13  ;;  %v1369_v12 = vpack.c.bf16 %v1344_v9, %v1343_v8  ;;  %v1347_v8 = vld [vmem:[%s1911_s25 + $0x80] sm:$0xff]  ;;  %v1348_v9 = vld [vmem:[%s1911_s25 + $0x88] sm:$0xff] }
 0x2c5   : > { %597 = vadd.xlane.f32.xlu0 %v596_v15  ;;  %v602_v16 = vpop.permute.xlu0 %601  ;;  %v1376_v13 = vpack.c.bf16 %v1358_v11, %v1357_v10  ;;  %v1342_v15 = vld [vmem:[%s1911_s25 + $0x58] sm:$0xff]  ;;  %v1331_v10 = vld [vmem:[%s1911_s25] sm:$0xff]  ;;  %v1371_v11 = vpack.c.bf16 %v1348_v9, %v1347_v8 }
 0x2c6   : > { %1774 = vpow2.f32 %v814_v14  ;;  %v607_v17 = vsel %vm492_vm4, %v602_v16, 0  ;;  %v1341_v14 = vld [vmem:[%s1911_s25 + $0x50] sm:$0xff]  ;;  %1604 = vmatpush3.bf16.msra.mxu1 %v1369_v12  ;;  %v1332_v12 = vld [vmem:[%s1911_s25 + $0x8] sm:$0xff] }
 0x2c7   : > { %1642 = vmatpush3.bf16.msra.mxu0 %v607_v17  ;;  %v1368_v16 = vpack.c.bf16 %v1342_v15, %v1341_v14  ;;  %1605 = vmatprep.subr.bf16.mxu1 %v1376_v13  ;;  %v1363_v14 = vpack.c.bf16 %v1332_v12, %v1331_v10 }
 0x2c8   : > { %1653 = vmatprep.subr.bf16.mxu0 %v1854_v29 }
 0x2ca   : > { %1644 = vmatmul.mubr.msk.bf16.vlgmr.msra.gmra.mxu0 %vm478_vm5, %v599_v18  ;;  %1606 = vmatpush3.bf16.msra.mxu1 %v1368_v16 }
 0x2cb   : > { %1654 = vmatpush3.bf16.msra.mxu0 %v714_v19  ;;  %1655 = vmatprep.mubr.msk.bf16.mxu0 %vm1855_vm2, %v1854_v29  ;;  %v1773_v20 = vpop.eup %1772 }
 0x2cc   : > { %1665 = vmatprep.subr.bf16.mxu0 %v1854_v29  ;;  %v709_v22 = vpack.c.bf16 %v1773_v20, %v1773_v20  ;;  %v706_v56 = vsel %vm478_vm5, %v1773_v20, 0.0 }
 0x2d2   : > { %1656 = vmatmul.mubr.msk.bf16.vlgmr.msra.gmra.mxu0 %vm478_vm5, %v709_v22 }
 0x2d3   : > { %v1775_v24 = vpop.eup %1774  ;;  %1666 = vmatpush3.bf16.msra.mxu0 %v827_v23  ;;  %1667 = vmatprep.mubr.msk.bf16.mxu0 %vm1855_vm2, %v1854_v29 }
 0x2d4   : > { %v816_v25 = vsel %vm478_vm5, %v1775_v24, 0.0  ;;  %1677 = vmatprep.subr.bf16.mxu0 %v1854_v29  ;;  %v819_v27 = vpack.c.bf16 %v1775_v24, %v1775_v24 }
 0x2d5   : > { %817 = vadd.xlane.f32.xlu1 %v816_v25 }
 0x2d9   : > { %486 = vadd.xlane.f32.xlu1 %v485_v26 }
 0x2da   : > { %1668 = vmatmul.mubr.msk.bf16.vlgmr.msra.gmra.mxu0 %vm478_vm5, %v819_v27 }
 0x2db   : > { %1678 = vmatpush3.bf16.msra.mxu0 %v944_v28  ;;  %1679 = vmatprep.mubr.msk.bf16.mxu0 %vm1855_vm2, %v1854_v29 }
 0x2dc   : > { %1689 = vmatprep.subr.bf16.mxu0 %v1854_v29 }
 0x2e6   : > { %v932_v30 = vpop.xlane.xlu1 %931 }
 0x2e7   : > { %v933_v31 = vsub.f32 %v2013_v40, %v932_v30 }
 0x2e9   : > { %v934_v32 = vmul.f32 1.442695, %v933_v31 }
 0x2ea   : > { %v1042_v33 = vpop.xlane.xlu1 %1041 }
 0x2eb   : > { %1776 = vpow2.f32 %v934_v32  ;;  %v1043_v34 = vsub.f32 %v2015_v47, %v1042_v33 }
 0x2ed   : > { %v1044_v35 = vmul.f32 1.442695, %v1043_v34  ;;  %v1355_v34 = vld [vmem:[%s1911_s25 + $0xc0] sm:$0xff] }
 0x2ee   : > { %v1152_v36 = vpop.xlane.xlu1 %1151 }
 0x2ef   : > { %1778 = vpow2.f32 %v1044_v35  ;;  %v1153_v37 = vsub.f32 %v2017_v51, %v1152_v36  ;;  %v1356_v35 = vld [vmem:[%s1911_s25 + $0xc8] sm:$0xff] }
 0x2f0   : > { %v1375_v36 = vpack.c.bf16 %v1356_v35, %v1355_v34 }
 0x2f1   : > { %v1154_v38 = vmul.f32 1.442695, %v1153_v37  ;;  %v1339_v37 = vld [vmem:[%s1911_s25 + $0x40] sm:$0xff] }
 0x2f2   : > { %v1052_v43 = vpop.permute.xlu1 %1051  ;;  %1607 = vmatprep.subr.bf16.mxu1 %v1375_v36 }
 0x2f3   : > { %1780 = vpow2.f32 %v1154_v38  ;;  %v1057_v40 = vsel %vm492_vm4, %v1052_v43, 0  ;;  %v1340_v38 = vld [vmem:[%s1911_s25 + $0x48] sm:$0xff]  ;;  %v1354_v43 = vld [vmem:[%s1911_s25 + $0xb8] sm:$0xff] }
 0x2f6   : > { %v1262_v39 = vpop.xlane.xlu0 %1261  ;;  %v1272_v51 = vpop.permute.xlu1 %1271 }
 0x2f7   : > { %v1263_v41 = vsub.f32 %v2023_v57, %v1262_v39  ;;  %v1277_v54 = vsel %vm492_vm4, %v1272_v51, 0  ;;  %v1335_v51 = vld [vmem:[%s1911_s25 + $0x20] sm:$0xff] }
 0x2f8   : > { %v1777_v42 = vpop.eup %1776 }
 0x2f9   : > { %v1264_v44 = vmul.f32 1.442695, %v1263_v41  ;;  %v939_v45 = vpack.c.bf16 %v1777_v42, %v1777_v42  ;;  %v936_v62 = vsel %vm478_vm5, %v1777_v42, 0.0  ;;  %v1367_v41 = vpack.c.bf16 %v1340_v38, %v1339_v37  ;;  %v1353_v42 = vld [vmem:[%s1911_s25 + $0xb0] sm:$0xff] }
 0x2fb   : > { %1782 = vpow2.f32 %v1264_v44  ;;  %1680 = vmatmul.mubr.msk.bf16.vlgmr.msra.gmra.mxu0 %vm478_vm5, %v939_v45  ;;  %v1337_v44 = vld [vmem:[%s1911_s25 + $0x30] sm:$0xff]  ;;  %1608 = vmatpush3.bf16.msra.mxu1 %v1367_v41 }
 0x2fc   : > { %1690 = vmatpush3.bf16.msra.mxu0 %v1057_v40  ;;  %1691 = vmatprep.mubr.msk.bf16.mxu0 %vm1855_vm2, %v1854_v29  ;;  %v1779_v46 = vpop.eup %1778  ;;  %v1374_v40 = vpack.c.bf16 %v1354_v43, %v1353_v42 }
 0x2fd   : > { %1701 = vmatprep.subr.bf16.mxu0 %v1854_v29  ;;  %v1049_v47 = vpack.c.bf16 %v1779_v46, %v1779_v46  ;;  %v1046_v55 = vsel %vm478_vm5, %v1779_v46, 0.0  ;;  %v1338_v46 = vld [vmem:[%s1911_s25 + $0x38] sm:$0xff] }
 0x2fe   : > { %1609 = vmatprep.subr.bf16.mxu1 %v1374_v40 }
 0x300   : > { %v1781_v49 = vpop.eup %1780 }
 0x301   : > { %v1159_v53 = vpack.c.bf16 %v1781_v49, %v1781_v49 }
 0x303   : > { %1692 = vmatmul.mubr.msk.bf16.vlgmr.msra.gmra.mxu0 %vm478_vm5, %v1049_v47  ;;  %v1351_v47 = vld [vmem:[%s1911_s25 + $0xa0] sm:$0xff] }
 0x304   : > { %1702 = vmatpush3.bf16.msra.mxu0 %v1164_v48  ;;  %1703 = vmatprep.mubr.msk.bf16.mxu0 %vm1855_vm2, %v1854_v29  ;;  %v1352_v48 = vld [vmem:[%s1911_s25 + $0xa8] sm:$0xff] }
 0x305   : > { %1713 = vmatprep.subr.bf16.mxu0 %v1854_v29 }
 0x308   : > { %v1783_v50 = vpop.eup %1782 }
 0x309   : > { %v1266_v52 = vsel %vm478_vm5, %v1783_v50, 0.0  ;;  %v1269_v57 = vpack.c.bf16 %v1783_v50, %v1783_v50  ;;  %v1373_v50 = vpack.c.bf16 %v1352_v48, %v1351_v47 }
 0x30a   : > { %1267 = vadd.xlane.f32.xlu0 %v1266_v52  ;;  %v1336_v52 = vld [vmem:[%s1911_s25 + $0x28] sm:$0xff] }
 0x30b   : > { %1704 = vmatmul.mubr.msk.bf16.vlgmr.msra.gmra.mxu0 %vm478_vm5, %v1159_v53 }
 0x30c   : > { %1714 = vmatpush3.bf16.msra.mxu0 %v1277_v54  ;;  %1715 = vmatprep.mubr.msk.bf16.mxu0 %vm1855_vm2, %v1854_v29  ;;  %v1156_v29 = vsel %vm478_vm5, %v1781_v49, 0.0  ;;  %v1366_v49 = vpack.c.bf16 %v1338_v46, %v1337_v44  ;;  %v1349_v54 = vld [vmem:[%s1911_s25 + $0x90] sm:$0xff] }
 0x30e   : > { %1047 = vadd.xlane.f32.xlu0 %v1046_v55  ;;  %v1350_v55 = vld [vmem:[%s1911_s25 + $0x98] sm:$0xff]  ;;  %1610 = vmatpush3.bf16.msra.mxu1 %v1366_v49 }
 0x30f   : > { %1611 = vmatprep.subr.bf16.mxu1 %v1373_v50  ;;  %v1372_v63 = vpack.c.bf16 %v1350_v55, %v1349_v54 }
 0x312   : > { %707 = vadd.xlane.f32.xlu0 %v706_v56 }
 0x313   : > { %v2081_v58 = vpop.f32.mrf.mxu0  ;;  %1716 = vmatmul.mubr.msk.bf16.vlgmr.msra.gmra.mxu0 %vm478_vm5, %v1269_v57 }
 0x315   : > { %v1633_v59 = vpop.f32.mrf.mxu0 }
 0x316   : > { %1157 = vadd.xlane.f32.xlu0 %v1156_v29 }
 0x317   : > { %v533_v60 = vpop.f32.mrf.mxu0 }
 0x318   : > { %v1365_v60 = vpack.c.bf16 %v1336_v52, %v1335_v51 }
 0x319   : > { %v1634_v61 = vpop.f32.mrf.mxu0 }
 0x31a   : > { %937 = vadd.xlane.f32.xlu0 %v936_v62  ;;  %1612 = vmatpush3.bf16.msra.mxu1 %v1365_v60 }
 0x31b   : > { %1613 = vmatprep.subr.bf16.mxu1 %v1372_v63 }
 0x31e   : > { %1614 = vmatpush3.bf16.msra.mxu1 %v1364_v5 }
 0x31f   : > { %1615 = vmatprep.subr.bf16.mxu1 %v1371_v11 }
 0x322   : > { %1616 = vmatpush3.bf16.msra.mxu1 %v1363_v14 }
 0x34e   : > { %v598_v30 = vpop.xlane.xlu0 %597 }
 0x34f   : > { %1784 = vrcp.f32 %v598_v30 }
 0x35c   : > { %v1785_v56 = vpop.eup %1784 }
 0x35e   : > { %v818_v57 = vpop.xlane.xlu1 %817 }
 0x38a   : > { %v643_v17 = vpop.f32.mrf.mxu0 }
 0x38b   : > { %v650_v61 = vmul.f32 %v1785_v56, %v643_v17 }
 0x38c   : > { %v1645_v18 = vpop.f32.mrf.mxu0 }
 0x38e   : > { %v646_v19 = vpop.f32.mrf.mxu0 }
 0x390   : > { %v1646_v20 = vpop.f32.mrf.mxu0 }
 0x392   : > { %v2098_v21 = vpop.f32.mrf.mxu0 }
 0x393   : > { %v1268_v31 = vpop.xlane.xlu0 %1267 }
 0x394   : > { %v1657_v22 = vpop.f32.mrf.mxu0 }
 0x396   : > { %v753_v23 = vpop.f32.mrf.mxu0 }
 0x397   : > { %v1048_v32 = vpop.xlane.xlu0 %1047 }
 0x398   : > { %v1658_v24 = vpop.f32.mrf.mxu0  ;;  %1786 = vrcp.f32 %v1048_v32 }
 0x399   : > { %1788 = vrcp.f32 %v818_v57  ;;  %v1380_v57 = vld [vmem:[#allocation2 + $0x8] sm:$0xff] }
 0x39a   : > { %v2100_v25 = vpop.f32.mrf.mxu0  ;;  %1790 = vrcp.f32 %v1268_v31  ;;  %v487_v31 = vpop.xlane.xlu1 %486 }
 0x39b   : > { %1792 = vrcp.f32 %v487_v31 }
 0x39c   : > { %v1669_v26 = vpop.f32.mrf.mxu0 }
 0x39e   : > { %v866_v27 = vpop.f32.mrf.mxu0 }
 0x3a0   : > { %v1670_v28 = vpop.f32.mrf.mxu0 }
 0x3a1   : > { %v708_v28 = vpop.xlane.xlu0 %707 }
 0x3a2   : > { %1794 = vrcp.f32 %v708_v28 }
 0x3a5   : > { %v1787_v59 = vpop.eup %1786  ;;  %v1158_v30 = vpop.xlane.xlu0 %1157 }
 0x3a6   : > { %v1789_v17 = vpop.eup %1788 }
 0x3a7   : > { %v1791_v18 = vpop.eup %1790  ;;  %v870_v20 = vmul.f32 %v1789_v17, %v2100_v25 }
 0x3a8   : > { %v1793_v35 = vpop.eup %1792 }
 0x3a9   : > { %v938_v32 = vpop.xlane.xlu0 %937  ;;  %v537_v42 = vmul.f32 %v1793_v35, %v2081_v58  ;;  %v1379_v58 = vld [vmem:[#allocation2] sm:$0xff] }
 0x3aa   : > { %1796 = vrcp.f32 %v938_v32 }
 0x3ab   : > { %1798 = vrcp.f32 %v1158_v30 }
 0x3af   : > { %v1795_v36 = vpop.eup %1794 }
 0x3b0   : > { %v757_v46 = vmul.f32 %v1795_v36, %v2098_v21 }
 0x3b7   : > { %v1797_v38 = vpop.eup %1796 }
 0x3bb   : > { %v2102_v33 = vpop.f32.mrf.mxu0 }
 0x3bc   : > { %v987_v41 = vmul.f32 %v1797_v38, %v2102_v33 }
 0x3bd   : > { %v1681_v39 = vpop.f32.mrf.mxu0 }
 0x3be   : > { %v1799_v39 = vpop.eup %1798 }
 0x3bf   : > { %v983_v45 = vpop.f32.mrf.mxu0 }
 0x3c1   : > { %v1682_v53 = vpop.f32.mrf.mxu0 }
 0x3c3   : > { %v1093_v29 = vpop.f32.mrf.mxu0 }
 0x3c4   : > { %v1100_v62 = vmul.f32 %v1787_v59, %v1093_v29 }
 0x3c5   : > { %v1693_v2 = vpop.f32.mrf.mxu0 }
 0x3c6   : > { %v1763_v3 = vpack.i.bf16 %v1100_v62, %v650_v61 }
 0x3c7   : > { %v1096_v4 = vpop.f32.mrf.mxu0 }
 0x3c8   : > { %1764 = vrot.lane.b32.xlu0 %v1763_v3, %s1856_s7 }
 0x3c9   : > { %v1694_v6 = vpop.f32.mrf.mxu0 }
 0x3cb   : > { %v1200_v7 = vpop.f32.mrf.mxu0 }
 0x3cc   : > { %v1207_v44 = vmul.f32 %v1799_v39, %v1200_v7 }
 0x3cd   : > { %v1705_v13 = vpop.f32.mrf.mxu0 }
 0x3cf   : > { %v1203_v15 = vpop.f32.mrf.mxu0 }
 0x3d1   : > { %v1706_v16 = vpop.f32.mrf.mxu0 }
 0x3d3   : > { %v1313_v19 = vpop.f32.mrf.mxu0 }
 0x3d4   : > { %v1320_v22 = vmul.f32 %v1791_v18, %v1313_v19 }
 0x3d5   : > { %v1717_v23 = vpop.f32.mrf.mxu0 }
 0x3d6   : > { %v1758_v24 = vpack.i.bf16 %v1320_v22, %v870_v20 }
 0x3d7   : > { %v1316_v26 = vpop.f32.mrf.mxu0 }
 0x3d8   : > { %1759 = vrot.lane.b32.xlu1 %v1758_v24, %s1856_s7 }
 0x3d9   : > { %v1718_v27 = vpop.f32.mrf.mxu0 }
 0x43a   : > { %v1765_v34 = vpop.permute.xlu0 %1764 }
 0x43b   : > { %v1767_v37 = vunpack.i.h.bf16 %v1765_v34  ;;  %v1766_v25 = vunpack.i.l.bf16 %v1765_v34 }
 0x43d   : > { %v1329_v47 = vsel %vm431_vm3, %v987_v41, %v1767_v37  ;;  %v879_v48 = vsel %vm431_vm3, %v537_v42, %v1766_v25 }
 0x43e   : > { %v1381_v52 = vpack.c.bf16 %v1329_v47, %v879_v48 }
 0x44a   : > { %v1760_v43 = vpop.permute.xlu1 %1759 }
 0x44b   : > { %v1762_v45 = vunpack.i.h.bf16 %v1760_v43  ;;  %v1761_v40 = vunpack.i.l.bf16 %v1760_v43 }
 0x44d   : > { %v880_v49 = vsel %vm431_vm3, %v757_v46, %v1761_v40  ;;  %v1330_v50 = vsel %vm431_vm3, %v1207_v44, %v1762_v45 }
 0x44e   : > { %v1382_v51 = vpack.c.bf16 %v1330_v50, %v880_v49 }
 0x450   : > { %1415 = vmatprep.mubr.bf16.mxu1 %v1382_v51 }
 0x451   : > { %1416 = vmatmul.mubr.bf16.vlgmr.msra.gmra.mxu1 %v1381_v52 }
 0x511   : > { %v1617_v33 = vpop.f32.mrf.mxu1 }
 0x513   : > { %v1618_v53 = vpop.f32.mrf.mxu1 }
 0x514   : > { %v1619_v54 = vadd.f32 %v1618_v53, %v1617_v33 }
 0x515   : > { %v1620_v55 = vpop.f32.mrf.mxu1 }
 0x516   : > { %v1424_v56 = vadd.f32 %v1619_v54, %v1379_v58 }
 0x517   : > { %v1621_v21 = vpop.f32.mrf.mxu1 }
 0x518   : > { %1426 = vst.msk [vmem:[#allocation2] sm:$0xff] %vm291_vm1, %v1424_v56  ;;  %v1622_v59 = vadd.f32 %v1621_v21, %v1620_v55  ;;  %1431 = sbr.rel (%p1562_p6) target bundleno = 1319 (0x527), region = 44 }
 0x51a   : > { %v1425_v29 = vadd.f32 %v1622_v59, %v1380_v57 }
 0x51c   : > { %1427 = vst.msk [vmem:[#allocation2 + $0x8] sm:$0xff] %vm291_vm1, %v1425_v29 }
 0x51d   : > { %v1563_v61 = vld [vmem:[%s2171_s3] ss:$0 sm:$0xff] }
 0x51f   : > { %v1432_v60 = vld [vmem:[#allocation2] sm:$0xff] }
 0x520   : > { %v1441_v63 = vadd.f32 %v1563_v61, %v1432_v60 }
 0x522   : > { %1443 = vst.msk [vmem:[#allocation3] sm:$0xff] %vm291_vm1, %v1441_v63 }
 0x523   : > { %v1433_v62 = vld [vmem:[#allocation2 + $0x8] sm:$0xff] }
 0x524   : > { %v1442_v0 = vadd.f32 %v1563_v61, %v1433_v62 }
 0x526   : > { %1444 = vst.msk [vmem:[#allocation3 + $0x8] sm:$0xff] %vm291_vm1, %v1442_v0 }
 0x527 PF: > { %p2144_p7 = scmp.eq.s32.totalorder %s1534_s18, 1  ;;  %s1857_s11 = smov [#allocation3]  }
 0x528   : > { %s1454_s12 = sshll.u32 %s1857_s11, 4  ;;  %s1455_s12 = int_to_ptr.vmem [resolvable:$true] %s1454_s12 }
 0x529   : > { %s1800_s13 = scalar_lea.vmem %s1455_s12, 256  ;;  %p1807_p11 = scmp.lt.s32.totalorder %s1455_s12, %s1455_s12 }
 0x52a   : > { %p1801_p8 = scmp.ne.s32.totalorder %s1455_s12, %s1800_s13  ;;  %p1808_p12 = scmp.lt.s32.totalorder %s1800_s13, %s1800_s13 }
 0x52c   : > { %p1802_p9 = pnand %p1801_p8, %p2144_p7  ;;  %p1809_p13 = por %p1808_p12, %p1807_p11 }
 0x52e   : > { %p1803_p10 = pneg %p1802_p9 }
 0x530   : > { %p1810_p0 = pnand %p1809_p13, %p1803_p10 }
 0x532   : > { %1813 = shalt.err (!%p1810_p0)
}
 0x533   : > { %s1858_s14 = smov 128   ;;  %s1859_s15 = smov 8  }
 0x534   : > { %1721 = dma.vmem_to_hbm [thread:$0]  (%p2144_p7), %s1455_s12, 256, %s2172_s4, [#allocation4], %s1858_s14, %s1858_s14, %s1859_s15  }
 0x535   : > { %1837 = dma.done.wait (%p2144_p7), [#allocation4], 256  }
 0x536   : > { %1839 = vsyncadd (%p2144_p7), [#allocation4], 4294967040 }
 0x537 PF: > { %s15_s17 = sadd.s32 1, %s1850_s17   ;;  %s2174_s15 = smov %s1846_s16 }
 0x538   : > { %p12_p1 = scmp.ge.s32.totalorder %s15_s17, 4   ;;  %s2175_s16 = smov %s2177_s19 }
 0x53a   :  { %14 = sbr.rel (!%p12_p1) target bundleno = 2 (0x2), region = 78 }
 0x53f   :  { %1470 = vsyncpa [#allocation4], 1 }
 0x540   :  { %1472 = vsyncpa [#allocation4 + $0x1], 1 }

</bundles_post_ra>
